<compile_context>
chip_gen: v6e
topology: v6e:2x2x1
jax: 0.10.0
libtpu: 0.0.40
codegen_flags: <defaults>
</compile_context>

<pallas_src>
import functools

import numpy as np
import jax
import jax.numpy as jnp
from jax.experimental import pallas as pl
from jax.experimental.pallas import tpu as pltpu


def _round_up(x, m):
    return (x + m - 1) // m * m


def classifier_kernel(x_ref, w_ref, b_ref, wsum_ref, o_ref, *,
                      z_normalize, eps, n_feat, matmul_dtype):
    x = x_ref[...]                                   # native (typically f32) tile
    xm = x if matmul_dtype is None else x.astype(matmul_dtype)

    # MXU: raw x @ W (f32 accumulation); normalize is applied as a rank-1
    # correction afterwards, so no full elementwise pass over the x tile.
    dot = jnp.dot(xm, w_ref[...], preferred_element_type=jnp.float32)

    if z_normalize:
        xf = x.astype(jnp.float32)
        s = jnp.sum(xf, axis=-1, keepdims=True)          # (tb, 1)
        sq = jnp.sum(xf * xf, axis=-1, keepdims=True)    # (tb, 1) one-pass stats
        mean = s * (1.0 / n_feat)
        # unbiased variance: (sum_sq - n*mean^2) / (n - 1); clamp tiny negatives
        var = jnp.maximum(sq - mean * s, 0.0) * (1.0 / (n_feat - 1))
        # approx=True -> EUP vrcp (its own bundle slot), keeps divide off VALU
        rscale = pl.reciprocal(jnp.sqrt(var) + eps, approx=True)
        # h @ W == rscale * (x @ W) - (mean * rscale) * colsum(W)
        logits = dot * rscale - (mean * rscale) * wsum_ref[...]
    else:
        logits = dot

    logits = logits + b_ref[...].astype(jnp.float32)
    o_ref[...] = logits.astype(o_ref.dtype)


def classifier_forward(x, w, b, *, z_normalize=True, eps=1e-5, tile_b=512,
                       matmul_dtype=None, out_dtype=jnp.float32,
                       pad_output_cols=False):
    """Pallas forward of Classifier.

    x: (B, feature_channel)
    w: (feature_channel, num_cls)   -- nn.Linear weight pre-transposed
    b: (num_cls,) or (1, num_cls)
    """
    B, Cin = x.shape
    num_cls = w.shape[1]
    b = jnp.asarray(b).reshape(1, num_cls)

    # ---- lane-dense output: pad num_cls up to a multiple of 128 ------------
    Cout_p = max(128, _round_up(num_cls, 128))
    if Cout_p != num_cls:
        w = jnp.pad(w, ((0, 0), (0, Cout_p - num_cls)))
        b = jnp.pad(b, ((0, 0), (0, Cout_p - num_cls)))

    # colsum(W) for the rank-1 normalize fold (f32, computed before any cast)
    wsum = jnp.sum(w.astype(jnp.float32), axis=0, keepdims=True)   # (1, Cout_p)

    # only the small resident weights/bias are cast in the wrapper; x is cast
    # in-vreg inside the kernel to avoid a full HBM round trip over x
    if matmul_dtype is not None:
        w = w.astype(matmul_dtype)

    # ---- row tile: large by default; multiple of 8 (f32 x) / 16 (bf16 x) ---
    sublane = 16 if x.dtype == jnp.bfloat16 else 8
    tile_b = max(sublane, _round_up(min(int(tile_b), B), sublane))
    # v7x has 2 TensorCores: make sure the parallel axis has >= 2 steps
    if pl.cdiv(B, tile_b) < 2 and B >= 2 * sublane:
        tile_b = _round_up(pl.cdiv(B, 2), sublane)

    # ---- generation-aware VMEM budget ---------------------------------------
    try:
        vmem_cap = int(pltpu.get_tpu_info().vmem_capacity_bytes)
    except Exception:  # pragma: no cover - conservative fallback
        vmem_cap = 64 * 1024 * 1024
    vmem_budget = int(0.8 * vmem_cap)

    def _bytes(tb):
        return (2 * tb * Cin * x.dtype.itemsize            # x tile (dbl-buffered)
                + 2 * Cin * Cout_p * w.dtype.itemsize      # W (resident, 2 bufs)
                + 2 * Cout_p * (b.dtype.itemsize + 4)      # bias + colsum(W)
                + 2 * tb * Cout_p * np.dtype(out_dtype).itemsize)

    while tile_b > sublane and 2 * _bytes(tile_b) > vmem_budget:
        tile_b = max(sublane, _round_up(tile_b // 2, sublane))

    vmem_limit = int(min(vmem_budget, max(2 * _bytes(tile_b), 32 * 1024 * 1024)))

    grid = (pl.cdiv(B, tile_b),)   # ragged last tile: masked writes, no batch pad

    kernel = functools.partial(
        classifier_kernel,
        z_normalize=bool(z_normalize),
        eps=float(eps),
        n_feat=Cin,
        matmul_dtype=matmul_dtype,
    )

    out = pl.pallas_call(
        kernel,
        out_shape=jax.ShapeDtypeStruct((B, Cout_p), out_dtype),
        grid_spec=pltpu.PrefetchScalarGridSpec(
            num_scalar_prefetch=0,
            grid=grid,
            in_specs=[
                pl.BlockSpec((tile_b, Cin), lambda i: (i, 0)),   # x row tile
                pl.BlockSpec((Cin, Cout_p), lambda i: (0, 0)),   # W (resident)
                pl.BlockSpec((1, Cout_p), lambda i: (0, 0)),     # bias (resident)
                pl.BlockSpec((1, Cout_p), lambda i: (0, 0)),     # colsum(W)
            ],
            out_specs=pl.BlockSpec((tile_b, Cout_p), lambda i: (i, 0)),
        ),
        compiler_params=pltpu.CompilerParams(
            dimension_semantics=("parallel",),
            vmem_limit_bytes=vmem_limit,
        ),
    )(x, w, b, wsum)

    if pad_output_cols:
        return out            # (B, Cout_p) lane-dense; consumer slices lazily
    return out[:, :num_cls]


def _reference(x, w, b, *, z_normalize=True, eps=1e-5):
    x = x.astype(jnp.float32)
    if z_normalize:
        mean = x.mean(-1, keepdims=True)
        std = jnp.sqrt(jnp.sum((x - mean) ** 2, -1, keepdims=True)
                       / (x.shape[-1] - 1))
        x = (x - mean) / (std + eps)
    return x @ w.astype(jnp.float32) + b.reshape(1, -1).astype(jnp.float32)


if __name__ == "__main__":
    # module config (synthetic, deterministic)
    # NOTE: Cin=32 / B=50 is far below the shapes where a standalone Pallas
    # kernel pays off (Cin >~ 256, large B) -- kept small for the smoke test.
    B = 50               # batch (not a tile multiple -> exercises ragged tile)
    feature_channel = 32
    num_cls = 10

    key = jax.random.PRNGKey(0)
    kx, kw, kb = jax.random.split(key, 3)

    x = jax.random.normal(kx, (B, feature_channel), dtype=jnp.float32)
    # nn.Linear default init (uniform +-1/sqrt(fan_in)); weight pre-transposed
    bound = 1.0 / (feature_channel ** 0.5)
    w = jax.random.uniform(kw, (feature_channel, num_cls), dtype=jnp.float32,
                           minval=-bound, maxval=bound)
    b = jax.random.uniform(kb, (num_cls,), dtype=jnp.float32,
                           minval=-bound, maxval=bound)

    ref = _reference(x, w, b)

    # f32 path, small row tile to exercise multi-step grid + ragged last tile
    out32 = classifier_forward(x, w, b, tile_b=16)
    out32 = jax.block_until_ready(out32)
    assert out32.shape == (B, num_cls)
    assert jnp.allclose(out32, ref, atol=5e-3, rtol=5e-3), "f32 path mismatch"

    # bf16 MXU path (f32 accumulation; x cast in-kernel), default large tile
    out16 = classifier_forward(x, w, b, matmul_dtype=jnp.bfloat16)
    out16 = jax.block_until_ready(out16)
    assert out16.shape == (B, num_cls)
    assert jnp.allclose(out16, ref, atol=5e-2, rtol=5e-2), "bf16 path mismatch"

    # z_normalize=False path (plain Linear)
    ref_nz = _reference(x, w, b, z_normalize=False)
    out_nz = classifier_forward(x, w, b, z_normalize=False)
    out_nz = jax.block_until_ready(out_nz)
    assert jnp.allclose(out_nz, ref_nz, atol=5e-3, rtol=5e-3), "no-norm mismatch"

    print("KERNEL_OK")
</pallas_src>

<mosaic_0001>
module attributes {stable_mosaic.version = 11 : i64} {
  func.func @classifier_kernel(%arg0: i32, %arg1: memref<16x32xf32, #tpu.memory_space<vmem>>, %arg2: memref<32x128xf32, #tpu.memory_space<vmem>>, %arg3: memref<1x128xf32, #tpu.memory_space<vmem>>, %arg4: memref<1x128xf32, #tpu.memory_space<vmem>>, %arg5: memref<16x128xf32, #tpu.memory_space<vmem>>) attributes {dimension_semantics = [#tpu.dimension_semantics<parallel>], iteration_bounds = array<i64: 4>, scalar_prefetch = 0 : i64, scratch_operands = 0 : i64, tpu.core_type = #tpu.core_type<tc>, window_params = [{transform_indices = @transform_0, window_bounds = array<i64: 16, 32>}, {pipeline_mode = #tpu.pipeline_mode<synchronous>, transform_indices = @transform_1, window_bounds = array<i64: 32, 128>}, {pipeline_mode = #tpu.pipeline_mode<synchronous>, transform_indices = @transform_2, window_bounds = array<i64: 1, 128>}, {pipeline_mode = #tpu.pipeline_mode<synchronous>, transform_indices = @transform_3, window_bounds = array<i64: 1, 128>}, {transform_indices = @transform_4, window_bounds = array<i64: 16, 128>}]} {
    %c0 = arith.constant 0 : index
    %c0_0 = arith.constant 0 : index
    %0 = vector.load %arg1[%c0, %c0_0] : memref<16x32xf32, #tpu.memory_space<vmem>>, vector<16x32xf32>
    %c0_1 = arith.constant 0 : index
    %c0_2 = arith.constant 0 : index
    %1 = vector.load %arg2[%c0_1, %c0_2] : memref<32x128xf32, #tpu.memory_space<vmem>>, vector<32x128xf32>
    %cst = arith.constant dense<0.000000e+00> : vector<16x128xf32>
    %2 = tpu.matmul %0, %1, %cst {dimension_numbers = #tpu.dot_dimension_numbers<[1], [0], [0], [1], [0, 0, 1, 1], [], []>} : vector<16x32xf32>, vector<32x128xf32>, vector<16x128xf32> -> vector<16x128xf32>
    %cst_3 = arith.constant dense<0.000000e+00> : vector<16xf32>
    %3 = vector.multi_reduction <add>, %0, %cst_3 [1] : vector<16x32xf32> to vector<16xf32>
    %4 = vector.shape_cast %3 : vector<16xf32> to vector<16x1xf32>
    %5 = arith.mulf %0, %0 : vector<16x32xf32>
    %cst_4 = arith.constant dense<0.000000e+00> : vector<16xf32>
    %6 = vector.multi_reduction <add>, %5, %cst_4 [1] : vector<16x32xf32> to vector<16xf32>
    %7 = vector.shape_cast %6 : vector<16xf32> to vector<16x1xf32>
    %cst_5 = arith.constant 3.125000e-02 : f32
    %8 = vector.broadcast %cst_5 : f32 to vector<16x1xf32>
    %9 = arith.mulf %4, %8 : vector<16x1xf32>
    %10 = arith.mulf %9, %4 : vector<16x1xf32>
    %11 = arith.subf %7, %10 : vector<16x1xf32>
    %cst_6 = arith.constant 0.000000e+00 : f32
    %12 = vector.broadcast %cst_6 : f32 to vector<16x1xf32>
    %13 = arith.maximumf %11, %12 : vector<16x1xf32>
    %cst_7 = arith.constant 0.0322580636 : f32
    %14 = vector.broadcast %cst_7 : f32 to vector<16x1xf32>
    %15 = arith.mulf %13, %14 : vector<16x1xf32>
    %16 = math.sqrt %15 : vector<16x1xf32>
    %cst_8 = arith.constant 9.99999974E-6 : f32
    %17 = vector.broadcast %cst_8 : f32 to vector<16x1xf32>
    %18 = arith.addf %16, %17 : vector<16x1xf32>
    %19 = tpu.reciprocal %18 {approx = true} : vector<16x1xf32> -> vector<16x1xf32>
    %20 = vector.broadcast %19 : vector<16x1xf32> to vector<16x128xf32>
    %21 = arith.mulf %2, %20 : vector<16x128xf32>
    %22 = arith.mulf %9, %19 : vector<16x1xf32>
    %c0_9 = arith.constant 0 : index
    %c0_10 = arith.constant 0 : index
    %23 = vector.load %arg4[%c0_9, %c0_10] : memref<1x128xf32, #tpu.memory_space<vmem>>, vector<1x128xf32>
    %24 = vector.broadcast %22 : vector<16x1xf32> to vector<16x128xf32>
    %25 = vector.broadcast %23 : vector<1x128xf32> to vector<16x128xf32>
    %26 = arith.mulf %24, %25 : vector<16x128xf32>
    %27 = arith.subf %21, %26 : vector<16x128xf32>
    %c0_11 = arith.constant 0 : index
    %c0_12 = arith.constant 0 : index
    %28 = vector.load %arg3[%c0_11, %c0_12] : memref<1x128xf32, #tpu.memory_space<vmem>>, vector<1x128xf32>
    %29 = vector.broadcast %28 : vector<1x128xf32> to vector<16x128xf32>
    %30 = arith.addf %27, %29 : vector<16x128xf32>
    %c0_13 = arith.constant 0 : index
    %c0_14 = arith.constant 0 : index
    %31 = vector.load %arg5[%c0_13, %c0_14] : memref<16x128xf32, #tpu.memory_space<vmem>>, vector<16x128xf32>
    tpu.vector_store %arg5[%c0_13, %c0_14], %30 {strides = array<i32>} : memref<16x128xf32, #tpu.memory_space<vmem>>, vector<16x128xf32>,
    return
  }
  func.func @transform_0(%arg0: i32) -> (i32, i32) {
    %c0_i32 = arith.constant 0 : i32
    %c0_i32_0 = arith.constant 0 : i32
    return %arg0, %c0_i32 : i32, i32
  }
  func.func @transform_1(%arg0: i32) -> (i32, i32) {
    %c0_i32 = arith.constant 0 : i32
    %c0_i32_0 = arith.constant 0 : i32
    %c0_i32_1 = arith.constant 0 : i32
    return %c0_i32, %c0_i32_0 : i32, i32
  }
  func.func @transform_2(%arg0: i32) -> (i32, i32) {
    %c0_i32 = arith.constant 0 : i32
    %c0_i32_0 = arith.constant 0 : i32
    %c0_i32_1 = arith.constant 0 : i32
    return %c0_i32, %c0_i32_0 : i32, i32
  }
  func.func @transform_3(%arg0: i32) -> (i32, i32) {
    %c0_i32 = arith.constant 0 : i32
    %c0_i32_0 = arith.constant 0 : i32
    %c0_i32_1 = arith.constant 0 : i32
    return %c0_i32, %c0_i32_0 : i32, i32
  }
  func.func @transform_4(%arg0: i32) -> (i32, i32) {
    %c0_i32 = arith.constant 0 : i32
    %c0_i32_0 = arith.constant 0 : i32
    return %arg0, %c0_i32 : i32, i32
  }
}

</mosaic_0001>

<bundles_post_ra>
// kernel: tpu_custom_call.1
= control target key start
LH: loop header
LB: loop body
LE: loop exit
PB: predicated region body
PF: predicated region fallthrough
CT: control target
= control target key end

     0   :  { %9 = vsyncpa [#allocation3], 0  ;;  %s781_s0 = inlined_call_operand.vmem [shape: f32[50,32], index: 0, kind: input, shape index: {}]   ;;  %s782_s1 = inlined_call_operand.vmem [shape: f32[32,128], index: 1, kind: input, shape index: {}]   ;;  %s783_s2 = inlined_call_operand.vmem [shape: f32[1,128], index: 2, kind: input, shape index: {}]   ;;  %s784_s3 = inlined_call_operand.vmem [shape: f32[1,128], index: 3, kind: input, shape index: {}]   ;;  %s785_s4 = inlined_call_operand.hbm [shape: f32[50,128], index: 4, kind: output, shape index: {}]  }
   0x1   :  { %11 = vsyncpa [#allocation3 + $0x1], 0  ;;  %s637_s15 = smov 0   ;;  %s639_s16 = smov 0  }
   0x2   :  { %s641_s17 = smov 0   ;;  %s643_s18 = smov 0  }
   0x3 LB: > { %s658_s19 = sadd.s32 4294967295, %s607_s18   ;;  %s461_s20 = sadd.s32 4294967294, %s607_s18   ;;  %s607_s18 = sphi %s643_s18, %s791_s18   ;;  %s603_s17 = sphi %s641_s17, %s790_s17   ;;  %s599_s16 = sphi %s639_s16, %s789_s16   ;;  %s595_s15 = sphi %s637_s15, %s788_s15  }
   0x4   : > { %s662_s21 = sadd.s32 1, %s607_s18   ;;  %s113_s22 = sadd.s32 1, %s603_s17 }
   0x5   : > { %s110_s23 = ssub.s32 %s607_s18, %s662_s21  ;;  %p123_p0 = scmp.ne.s32.totalorder %s603_s17, %s599_s16 }
   0x6   : > { %p111_p1 = scmp.eq.s32.totalorder %s110_s23, 0  ;;  %p124_p2 = scmp.eq.s32.totalorder %s658_s19, 3 }
   0x7   : > { %p129_p3 = scmp.ne.s32.totalorder %s599_s16, %s595_s15  ;;  %p130_p4 = scmp.eq.s32.totalorder %s461_s20, 3 }
   0x8   : > { %s673_s24 = scalar_select %p111_p1, %s603_s17, %s113_s22  }
   0x9   : > { %p675_p5 = por %p124_p2, %p123_p0  ;;  %p679_p6 = por %p130_p4, %p129_p3 }
   0xa   : > { %p464_p7 = scmp.ge.s32.totalorder %s607_s18, 1  ;;  %p174_p8 = scmp.lt.s32.totalorder %s607_s18, 5 }
   0xc   : > { %p175_p9 = pnand %p464_p7, %p174_p8 }
   0xd   : > { %s692_s5 = sshll.u32 (!%p175_p9), %s658_s19, 1  ;;  %s201_s20 = sand.u32 (!%p175_p9), 1, %s599_s16  }
   0xe   : > { %178 = sbr.rel (%p175_p9) target bundleno = 257 (0x101), region = 36  ;;  %p209_p10 = scmp.lt.s32.totalorder (!%p175_p9), %s692_s5, 6 }
   0xf   : > { %s465_s27 = sshll.u32 (!%p175_p9), %s201_s20, 4  ;;  %s722_s6 = scalar_lea.sflag (!%p175_p9), [#allocation3], %s201_s20 }
  0x10   : > { %s203_s30 = scalar_lea.vmem (!%p175_p9), [#allocation2], %s465_s27 }
  0x13   : > { %v228_v0 = vld [vmem:[%s782_s1 + $0x18] sm:$0xff]  ;;  %v227_v1 = vld [vmem:[%s782_s1 + $0x10] sm:$0xff]  ;;  %v226_v2 = vld [vmem:[%s782_s1 + $0x8] sm:$0xff]  ;;  %s210_s8 = scalar_select %p209_p10, %s692_s5, 6  ;;  %vm229_vm0 = vcmask 261120  }
  0x14   : > { %488 = vmatprep.subr.mxu0 %v228_v0  ;;  %v225_v3 = vld [vmem:[%s782_s1] sm:$0xff]  ;;  %s388_s7 = ssub.s32 (%p675_p5), 7, %s692_s5 }
  0x15   : > { %489 = vmatpush3.msra.mxu0 %v228_v0  ;;  %s467_s11 = sshll.u32 %s210_s8, 3  ;;  %v470_v43 = vld [vmem:[%s784_s3] ss:$0 sm:$0xff]  ;;  %p389_p11 = scmp.lt.s32.totalorder (%p675_p5), %s388_s7, 2 }
  0x16   : > { %490 = vmatprep.subr.mxu0 %v227_v1  ;;  %s212_s14 = scalar_lea.vmem %s781_s0, %s467_s11  ;;  %v471_v46 = vld [vmem:[%s783_s2] ss:$0 sm:$0xff] }
  0x17   : > { %491 = vmatpush3.msra.mxu0 %v227_v1  ;;  %v223_v4 = vld [vmem:[%s212_s14] sm:$0xff]  ;;  %v224_v5 = vld [vmem:[%s212_s14 + $0x8] sm:$0xff] }
  0x18   : > { %492 = vmatprep.subr.mxu0 %v226_v2  ;;  %496 = vmatprep.mubr.msk.f32.mxu0 %vm229_vm0, %v223_v4  ;;  %v311_v6 = vsel %vm229_vm0, %v223_v4, 0.0  ;;  %v317_v7 = vmul.f32 %v223_v4, %v223_v4  ;;  %v318_v8 = vmul.f32 %v224_v5, %v224_v5  ;;  %v314_v10 = vsel %vm229_vm0, %v224_v5, 0.0 }
  0x19   : > { %493 = vmatpush3.msra.mxu0 %v226_v2  ;;  %312 = vadd.xlane.f32.xlu0 %v311_v6 }
  0x1a   : > { %494 = vmatprep.subr.mxu0 %v225_v3  ;;  %v319_v9 = vsel %vm229_vm0, %v317_v7, 0.0  ;;  %v322_v11 = vsel %vm229_vm0, %v318_v8, 0.0 }
  0x1b   : > { %495 = vmatpush3.msra.mxu0 %v225_v3  ;;  %320 = vadd.xlane.f32.xlu1 %v319_v9 }
  0x1c   : > { %497 = vmatmul.mubr.msk.f32.vlgmr.msra.gmra.mxu0 %vm229_vm0, %v224_v5 }
  0x1d   : > { %315 = vadd.xlane.f32.xlu0 %v314_v10 }
  0x1f   : > { %323 = vadd.xlane.f32.xlu1 %v322_v11 }
  0xa2   : > { %v313_v12 = vpop.xlane.xlu0 %312 }
  0xa3   : > { %v325_v13 = vmul.f32 0.03125, %v313_v12 }
  0xa4   : > { %v321_v14 = vpop.xlane.xlu1 %320 }
  0xa5   : > { %v327_v15 = vmul.f32 %v325_v13, %v313_v12 }
  0xa6   : > { %v316_v16 = vpop.xlane.xlu0 %315 }
  0xa7   : > { %v329_v17 = vsub.f32 %v321_v14, %v327_v15  ;;  %v326_v18 = vmul.f32 0.03125, %v316_v16 }
  0xa8   : > { %v324_v19 = vpop.xlane.xlu1 %323 }
  0xa9   : > { %v331_v20 = vmax.f32 %v329_v17, 0.0  ;;  %v328_v21 = vmul.f32 %v326_v18, %v316_v16 }
  0xab   : > { %v333_v22 = vmul.f32 0.032258064, %v331_v20  ;;  %v330_v23 = vsub.f32 %v324_v19, %v328_v21 }
  0xad   : > { %539 = vrsqrt.f32 %v333_v22  ;;  %v332_v24 = vmax.f32 %v330_v23, 0.0  ;;  %vm337_vm1 = vcmp.eq.f32.partialorder %v333_v22, inf  ;;  %v340_v30 = vand.u32 2147483648, %v333_v22 }
  0xae   : > { %vm339_vm3 = vcmp.eq.f32.partialorder %v333_v22, 0.0 }
  0xaf   : > { %v334_v25 = vmul.f32 0.032258064, %v332_v24 }
  0xb1   : > { %541 = vrsqrt.f32 %v334_v25  ;;  %vm344_vm2 = vcmp.eq.f32.partialorder %v334_v25, inf  ;;  %v347_v32 = vand.u32 2147483648, %v334_v25  ;;  %vm346_vm4 = vcmp.eq.f32.partialorder %v334_v25, 0.0 }
  0xba   : > { %v540_v26 = vpop.eup %539 }
  0xbb   : > { %v336_v27 = vmul.f32 %v540_v26, %v333_v22 }
  0xbd   : > { %v338_v29 = vsel %vm337_vm1, %v333_v22, %v336_v27 }
  0xbe   : > { %v542_v28 = vpop.eup %541  ;;  %v341_v34 = vsel %vm339_vm3, %v340_v30, %v338_v29 }
  0xbf   : > { %v343_v31 = vmul.f32 %v542_v28, %v334_v25  ;;  %v349_v37 = vadd.f32 1e-05, %v341_v34 }
  0xc1   : > { %v345_v33 = vsel %vm344_vm2, %v334_v25, %v343_v31 }
  0xc2   : > { %v348_v35 = vsel %vm346_vm4, %v347_v32, %v345_v33 }
  0xc3   : > { %v350_v36 = vadd.f32 1e-05, %v348_v35 }
  0xc5   : > { %543 = vrcp.f32 %v350_v36 }
  0xc6   : > { %545 = vrcp.f32 %v349_v37 }
  0xd2   : > { %v544_v38 = vpop.eup %543 }
  0xd3   : > { %v546_v39 = vpop.eup %545  ;;  %v356_v40 = vmul.f32 %v544_v38, %v326_v18 }
  0xd4   : > { %v355_v41 = vmul.f32 %v546_v39, %v325_v13 }
  0xd5   : > { %v365_v45 = vmul.f32 %v470_v43, %v356_v40 }
  0xd6   : > { %v364_v50 = vmul.f32 %v470_v43, %v355_v41 }
  0xdc   : > { %v498_v42 = vpop.f32.mrf.mxu0 }
  0xdd   : > { %v354_v44 = vmul.f32 %v544_v38, %v498_v42 }
  0xde   : > { %v302_v47 = vpop.f32.mrf.mxu0 }
  0xdf   : > { %v367_v48 = vsub.f32 %v354_v44, %v365_v45  ;;  %v353_v49 = vmul.f32 %v546_v39, %v302_v47 }
  0xe1   : > { %v376_v51 = vadd.f32 %v471_v46, %v367_v48  ;;  %v366_v52 = vsub.f32 %v353_v49, %v364_v50  ;;  %386 = sbr.rel (!%p675_p5) target bundleno = 257 (0x101), region = 40 }
  0xe3   : > { %378 = vst [vmem:[%s203_s30 + $0x8] sm:$0xff] %v376_v51  ;;  %v375_v53 = vadd.f32 %v471_v46, %v366_v52 }
  0xe5   : > { %377 = vst [vmem:[%s203_s30] sm:$0xff] %v375_v53 }
  0xe6   : > { %s793_s7 = smov (!%p389_p11, %s388_s7), 2 }
  0xe7   : > { %s727_s8 = sshll.u32 %s793_s7, 7 }
  0xe8   : > { %s393_s9 = ssub.s32 256, %s727_s8 }
  0xe9   : > { %394 = vsyncadd %s722_s6, %s393_s9  ;;  %p475_p12 = scmp.ne.s32.totalorder %s727_s8, 0  ;;  %s481_s10 = sshll.u32 %s658_s19, 8 }
  0xea   : > { %s736_s25 = scalar_lea.hbm %s785_s4, %s481_s10  ;;  %s399_s13 = sshll.u32 %s203_s30, 4  ;;  %s738_s13 = int_to_ptr.vmem [resolvable:$true] %s399_s13 }
  0xeb   : > { %s547_s5 = scalar_lea.vmem %s738_s13, %s727_s8  ;;  %s609_s14 = smov [#allocation2]  }
  0xec   : > { %p548_p13 = scmp.ne.s32.totalorder %s738_s13, %s547_s5  ;;  %s551_s20 = sshll.u32 %s609_s14, 4  ;;  %s552_s20 = int_to_ptr.vmem [resolvable:$false] %s551_s20 }
  0xed   : > { %s553_s19 = scalar_lea.vmem %s552_s20, 512  ;;  %p554_p2 = scmp.lt.s32.totalorder %s738_s13, %s552_s20 }
  0xee   : > { %p549_p0 = pnand %p548_p13, %p475_p12  ;;  %p555_p3 = scmp.lt.s32.totalorder %s553_s19, %s547_s5 }
  0xf0   : > { %p550_p1 = pneg %p549_p0  ;;  %p556_p4 = por %p555_p3, %p554_p2 }
  0xf2   : > { %p557_p5 = pnand %p556_p4, %p550_p1 }
  0xf4   : > { %560 = shalt.err (!%p557_p5)
}
  0xf5   : > { %s561_s22 = scalar_lea.hbm %s736_s25, %s727_s8  ;;  %s565_s28 = scalar_lea.hbm %s785_s4, 896 }
  0xf6   : > { %p562_p7 = scmp.ne.s32.totalorder %s736_s25, %s561_s22  ;;  %p566_p10 = scmp.lt.s32.totalorder %s736_s25, %s785_s4 }
  0xf7   : > { %p567_p11 = scmp.lt.s32.totalorder %s565_s28, %s561_s22 }
  0xf8   : > { %p563_p8 = pnand %p562_p7, %p475_p12 }
  0xf9   : > { %p568_p13 = por %p567_p11, %p566_p10 }
  0xfa   : > { %p564_p9 = pneg %p563_p8 }
  0xfc   : > { %p569_p0 = pnand %p568_p13, %p564_p9 }
  0xfe   : > { %572 = shalt.err (!%p569_p0)
}
  0xff   : > { %s610_s7 = smov 128   ;;  %s611_s9 = smov 8  }
 0x100   : > { %405 = dma.vmem_to_hbm [thread:$0]  (%p475_p12), %s738_s13, %s727_s8, %s736_s25, %s722_s6, %s610_s7, %s610_s7, %s611_s9  }
 0x101 PF: > { %p504_p1 = scmp.ge.s32.totalorder %s607_s18, 2  ;;  %s414_s10 = sand.u32 1, %s595_s15  }
 0x102   : > { %s415_s11 = scalar_lea.sflag [#allocation3], %s414_s10 }
 0x103   : > { %p501_p2 = pnand %p504_p1, %p679_p6 }
 0x105   : > { %p502_p3 = pneg %p501_p2 }
 0x107   : > { %590 = dma.done.wait (%p502_p3), %s415_s11, 256  }
 0x108   : > { %592 = vsyncadd (%p502_p3), %s415_s11, 4294967040  ;;  %p14_p4 = scmp.ge.s32.totalorder %s662_s21, 6   ;;  %s788_s15 = smov %s599_s16 }
 0x109   : > { %s789_s16 = smov %s603_s17  ;;  %s790_s17 = smov %s673_s24 }
 0x10a   : > { %s791_s18 = smov %s662_s21  ;;  %16 = sbr.rel (!%p14_p4) target bundleno = 3 (0x3), region = 71 }
 0x10f   :  { %420 = vsyncpa [#allocation3], 1 }
 0x110   :  { %422 = vsyncpa [#allocation3 + $0x1], 1 }

</bundles_post_ra>
